<compile_context>
chip_gen: v5e
topology: v5e:2x2
jax: 0.10.0
libtpu: 0.0.40
codegen_flags: <defaults>
</compile_context>

<pallas_src>
import functools

import jax
import jax.numpy as jnp
from jax.experimental import pallas as pl
from jax.experimental.pallas import tpu as pltpu

BN_EPS = 1e-5


# --------------------------------------------------------------------------
# Fused single-pass kernel: whole (C, HW) slab per batch element in VMEM.
# --------------------------------------------------------------------------
def _gc_fused_kernel(x_ref, wa_ref, wv1t_ref, bias_ref, wv2t_ref, o_ref):
    x = x_ref[...]                                              # (bt, C, HW) native dtype
    bt, c, _ = x.shape

    # conv_a: per-batch (1,C) @ (C,HW) on the MXU, f32 accumulation.
    wa_b = jnp.broadcast_to(wa_ref[...][None], (bt, 1, c))
    logits = jnp.einsum("bzc,bch->bzh", wa_b, x,
                        preferred_element_type=jnp.float32)     # (bt, 1, HW) f32

    # Numerically-stable softmax over spatial positions (kept unnormalized;
    # Mosaic masks the ragged lane tail of the reductions).
    m = jnp.max(logits, axis=-1, keepdims=True)                 # (bt, 1, 1)
    e = jnp.exp(logits - m)                                     # (bt, 1, HW)
    denom = jnp.sum(e, axis=-1, keepdims=True)                  # (bt, 1, 1)

    # Global context on the MXU, then exact normalization in f32.
    ctx = jnp.einsum("bzh,bch->bzc", e.astype(x.dtype), x,
                     preferred_element_type=jnp.float32)        # (bt, 1, C)
    ctx2 = ctx[:, 0] / denom[:, 0]                              # (bt, C)

    # Channel MLP (BN folded into wv1t / bias): two tiny 2-D f32 matmuls.
    y = jnp.maximum(
        jnp.dot(ctx2, wv1t_ref[...], preferred_element_type=jnp.float32)
        + bias_ref[...], 0.0)                                   # (bt, OC)
    yv = jnp.dot(y, wv2t_ref[...],
                 preferred_element_type=jnp.float32)            # (bt, C)

    # Residual add in the native dtype, broadcast over HW.
    o_ref[...] = x + yv[:, :, None].astype(o_ref.dtype)


# --------------------------------------------------------------------------
# Fallback pass 1: HW-tiled online softmax + context accumulation + MLP.
# --------------------------------------------------------------------------
def _gc_ctx_kernel(x_ref, wa_ref, wv1t_ref, bias_ref, wv2t_ref, yv_ref,
                   m_sc, l_sc, acc_sc, *, hw, hw_t):
    kv = pl.program_id(1)

    @pl.when(kv == 0)
    def _():
        m_sc[...] = jnp.full_like(m_sc, -jnp.inf)
        l_sc[...] = jnp.zeros_like(l_sc)
        acc_sc[...] = jnp.zeros_like(acc_sc)

    x = x_ref[0]                                                # (C, hw_t) native dtype
    pos = kv * hw_t + jax.lax.broadcasted_iota(jnp.int32, (1, hw_t), 1)
    valid = pos < hw                                            # (1, hw_t)
    if hw % hw_t != 0:
        # Ragged tail: keep out-of-bounds lanes of x out of the contraction.
        x = jnp.where(valid, x, jnp.zeros((), x.dtype))

    logits = jnp.dot(wa_ref[...], x,
                     preferred_element_type=jnp.float32)        # (1, hw_t) f32
    logits = jnp.where(valid, logits, -jnp.inf)

    m_prev = m_sc[...]
    m_new = jnp.maximum(m_prev, jnp.max(logits, axis=-1, keepdims=True))
    alpha = jnp.exp(m_prev - m_new)
    p = jnp.where(valid, jnp.exp(logits - m_new), 0.0)          # (1, hw_t) f32
    l_sc[...] = alpha * l_sc[...] + jnp.sum(p, axis=-1, keepdims=True)
    ctx_t = jax.lax.dot_general(p.astype(x.dtype), x,
                                (((1,), (1,)), ((), ())),
                                preferred_element_type=jnp.float32)  # (1, C)
    acc_sc[...] = alpha * acc_sc[...] + ctx_t
    m_sc[...] = m_new

    @pl.when(kv == pl.num_programs(1) - 1)
    def _():
        ctx2 = acc_sc[...] / l_sc[...]                          # (1, C) exact normalize
        y = jnp.maximum(
            jnp.dot(ctx2, wv1t_ref[...], preferred_element_type=jnp.float32)
            + bias_ref[...], 0.0)                               # (1, OC)
        yv = jnp.dot(y, wv2t_ref[...],
                     preferred_element_type=jnp.float32)        # (1, C)
        yv_ref[...] = yv[:, :, None]                            # (1, C, 1)


# --------------------------------------------------------------------------
# Fallback pass 2: HW-tiled residual broadcast-add.
# --------------------------------------------------------------------------
def _gc_residual_kernel(x_ref, yv_ref, o_ref):
    o_ref[...] = x_ref[...] + yv_ref[...].astype(o_ref.dtype)


# --------------------------------------------------------------------------
# Host-side helpers / wrapper.
# --------------------------------------------------------------------------
def _vmem_capacity_bytes():
    try:
        return int(pltpu.get_tpu_info().vmem_capacity_bytes)
    except Exception:
        return 64 << 20                 # conservative (v7x-sized) fallback


def _num_tensorcores():
    # Best-effort TensorCore count (v7x has 2 per chip, v5e/v6e have 1).
    # Unknown -> 1, which simply drops the ">= 2 grid steps" clamp.
    try:
        info = pltpu.get_tpu_info()
        for name in ("num_cores", "core_count", "tensor_core_count",
                     "num_tensorcores"):
            v = getattr(info, name, None)
            if isinstance(v, int) and v > 0:
                return int(v)
    except Exception:
        pass
    return 1


def gc_block(x_nchw, params, *, vmem_budget_bytes=None, force_hw_tiling=False,
             hw_tile=None, donate_x=False):
    """GCBlock forward. params = (wa, wv1, gamma, beta, mean, var, wv2)."""
    wa, wv1, gamma, beta, mean, var, wv2 = params
    n, c, h, w = x_nchw.shape
    hw = h * w
    oc = wv1.shape[0]
    dtype = x_nchw.dtype
    itemsize = jnp.dtype(dtype).itemsize

    # Fold inference-mode BatchNorm into conv_v[0] (per output channel).
    # TODO(synk): training-mode BatchNorm (batch statistics / running-stat
    # updates) is not implemented; eval-mode running stats are folded here.
    scale = gamma[:, 0].astype(jnp.float32) * jax.lax.rsqrt(
        var[:, 0].astype(jnp.float32) + BN_EPS)
    wv1t = (wv1.astype(jnp.float32) * scale[:, None]).T          # (C, OC) f32
    bias = (beta[:, 0].astype(jnp.float32)
            - mean[:, 0].astype(jnp.float32) * scale).reshape(1, oc)
    wv2t = wv2.astype(jnp.float32).T                             # (OC, C) f32
    wa_c = wa.astype(dtype)                                      # (1, C) native dtype

    x = x_nchw.reshape(n, c, hw)                                 # no pad, no slice

    vmem_cap = int(vmem_budget_bytes) if vmem_budget_bytes else _vmem_capacity_bytes()
    io_budget = (vmem_cap * 3) // 5                              # share for pipelined blocks
    w_bytes = (c * oc * 2 + oc) * 4 + c * itemsize               # resident weights

    # Fused-path footprint per batch element: x block + out block, each
    # double-buffered, plus the f32 logits / e intermediates.
    per_batch = 4 * c * hw * itemsize + 3 * hw * 4

    use_hw_tiling = force_hw_tiling or (per_batch + w_bytes > io_budget)

    def full_spec(shape):
        return pl.BlockSpec(shape, lambda *_idx, _z=(0,) * len(shape): _z)

    if not use_hw_tiling:
        # ---------------- Fused single-pass kernel, batch-tiled grid --------
        num_tc = _num_tensorcores()
        cap_tile = max(1, (io_budget - w_bytes) // per_batch)
        if num_tc >= 2 and n > 1:
            # Keep >= num_tc grid steps so both TensorCores get work (v7x only).
            cap_tile = min(cap_tile, max(1, n // num_tc))
        b_tile = 1
        for d in range(1, n + 1):
            if n % d == 0 and d <= cap_tile:
                b_tile = d
        grid = (n // b_tile,)

        need = b_tile * per_batch + 2 * w_bytes + (4 << 20)
        vmem_limit = int(min(vmem_cap * 7 // 8, max(32 << 20, need)))

        out = pl.pallas_call(
            _gc_fused_kernel,
            out_shape=jax.ShapeDtypeStruct((n, c, hw), dtype),
            grid=grid,
            in_specs=[
                pl.BlockSpec((b_tile, c, hw), lambda b: (b, 0, 0)),  # x
                full_spec((1, c)),                                   # conv_a weight
                full_spec((c, oc)),                                  # conv_v[0].T * BN scale
                full_spec((1, oc)),                                  # folded BN bias
                full_spec((oc, c)),                                  # conv_v[3].T
            ],
            out_specs=pl.BlockSpec((b_tile, c, hw), lambda b: (b, 0, 0)),
            input_output_aliases=({0: 0} if donate_x else {}),
            compiler_params=pltpu.CompilerParams(
                dimension_semantics=("parallel",),
                vmem_limit_bytes=vmem_limit),
        )(x, wa_c, wv1t, bias, wv2t)
        return out.reshape(n, c, h, w)

    # ---------------- Fallback: HW-tiled two-pass path -----------------------
    if hw_tile is not None:
        hw_t = int(hw_tile)
    else:
        hw_t = max(128, (io_budget // (5 * c * itemsize)) // 128 * 128)
    hw_t = max(128, min(hw_t, ((hw + 127) // 128) * 128))
    n_hw_t = pl.cdiv(hw, hw_t)

    need = 5 * c * hw_t * itemsize + 2 * w_bytes + c * 4 + (8 << 20)
    vmem_limit = int(min(vmem_cap * 7 // 8, max(32 << 20, need)))

    ctx_kernel = functools.partial(_gc_ctx_kernel, hw=hw, hw_t=hw_t)
    yv = pl.pallas_call(
        ctx_kernel,
        out_shape=jax.ShapeDtypeStruct((n, c, 1), jnp.float32),
        grid=(n, n_hw_t),
        in_specs=[
            pl.BlockSpec((1, c, hw_t), lambda b, k: (b, 0, k)),      # x
            full_spec((1, c)),
            full_spec((c, oc)),
            full_spec((1, oc)),
            full_spec((oc, c)),
        ],
        out_specs=pl.BlockSpec((1, c, 1), lambda b, k: (b, 0, 0)),
        scratch_shapes=[pltpu.VMEM((1, 1), jnp.float32),             # running max
                        pltpu.VMEM((1, 1), jnp.float32),             # running denom
                        pltpu.VMEM((1, c), jnp.float32)],            # running context
        compiler_params=pltpu.CompilerParams(
            dimension_semantics=("parallel", "arbitrary"),
            vmem_limit_bytes=vmem_limit),
    )(x, wa_c, wv1t, bias, wv2t)

    out = pl.pallas_call(
        _gc_residual_kernel,
        out_shape=jax.ShapeDtypeStruct((n, c, hw), dtype),
        grid=(n, n_hw_t),
        in_specs=[
            pl.BlockSpec((1, c, hw_t), lambda b, k: (b, 0, k)),      # x
            pl.BlockSpec((1, c, 1), lambda b, k: (b, 0, 0)),         # yv
        ],
        out_specs=pl.BlockSpec((1, c, hw_t), lambda b, k: (b, 0, k)),
        compiler_params=pltpu.CompilerParams(
            dimension_semantics=("parallel", "parallel"),
            vmem_limit_bytes=vmem_limit),
    )(x, yv)
    return out.reshape(n, c, h, w)


# --------------------------------------------------------------------------
# Pure-JAX reference mirroring the PyTorch forward (eval-mode BN).
# --------------------------------------------------------------------------
def gc_block_ref(x, params):
    wa, wv1, gamma, beta, mean, var, wv2 = params
    n, c, h, w = x.shape
    xv = x.astype(jnp.float32).reshape(n, c, h * w)
    logits = jnp.einsum("c,nck->nk", wa[0].astype(jnp.float32), xv)   # (n, hw)
    att = jax.nn.softmax(logits, axis=-1)                             # (n, hw)
    ctx = jnp.einsum("nck,nk->nc", xv, att)                           # (n, c)
    y = ctx @ wv1.T                                                   # (n, oc)
    y = (y - mean[:, 0]) / jnp.sqrt(var[:, 0] + BN_EPS) * gamma[:, 0] + beta[:, 0]
    y = jnp.maximum(y, 0.0)
    y = y @ wv2.T                                                     # (n, c)
    return xv.reshape(n, c, h, w) + y[:, :, None, None]


def make_params(key, in_c, ratio):
    out_c = in_c // ratio
    assert out_c >= 1, "in_c // ratio must be >= 1"
    k = jax.random.split(key, 6)
    wa = jax.random.normal(k[0], (1, in_c), jnp.float32) * 0.2        # conv_a (1,C,1,1)
    wv1 = jax.random.normal(k[1], (out_c, in_c), jnp.float32) * 0.2   # conv_v[0] (OC,C,1,1)
    wv2 = jax.random.normal(k[2], (in_c, out_c), jnp.float32) * 0.2   # conv_v[3] (C,OC,1,1)
    gamma = 1.0 + 0.1 * jax.random.normal(k[3], (out_c, 1), jnp.float32)
    beta = 0.1 * jax.random.normal(k[4], (out_c, 1), jnp.float32)
    mean = 0.1 * jax.random.normal(k[5], (out_c, 1), jnp.float32)
    var = jnp.ones((out_c, 1), jnp.float32) * 1.2
    return (wa, wv1, gamma, beta, mean, var, wv2)


if __name__ == "__main__":
    # Small shapes consistent with the module: N=2, C=8, H=W=16, ratio=4 -> OC=2
    N, C, H, W = 2, 8, 16, 16
    RATIO = 4

    key = jax.random.PRNGKey(0)
    kx, kp, kx2 = jax.random.split(key, 3)
    params = make_params(kp, C, RATIO)

    # f32 tolerance covers MXU default-precision matmuls differing from the
    # XLA reference; the softmax normalization itself is exact.
    F32_TOL = dict(atol=5e-3, rtol=5e-3)

    # 1) Fused path, f32, HW a multiple of 128.
    x = jax.random.normal(kx, (N, C, H, W), jnp.float32)
    out = jax.block_until_ready(gc_block(x, params))
    ref = gc_block_ref(x, params)
    assert out.shape == x.shape and out.dtype == x.dtype
    assert jnp.allclose(out, ref, **F32_TOL), (
        f"fused f32: max abs err = {jnp.max(jnp.abs(out - ref))}")

    # 2) Fused path, bf16 inputs (native-dtype blocks feed the MXU directly).
    xb = x.astype(jnp.bfloat16)
    outb = jax.block_until_ready(gc_block(xb, params))
    refb = gc_block_ref(xb, params)
    assert outb.dtype == jnp.bfloat16 and outb.shape == x.shape
    assert jnp.allclose(outb.astype(jnp.float32), refb, atol=1e-1, rtol=1e-1), (
        f"fused bf16: max abs err = "
        f"{jnp.max(jnp.abs(outb.astype(jnp.float32) - refb))}")

    # 3) Ragged spatial extent (HW = 324, not a multiple of 128): fused path
    #    (full-extent last dim, Mosaic masks the tail) and the HW-tiled
    #    online-softmax fallback forced on the same input.
    x2 = jax.random.normal(kx2, (N, C, 18, 18), jnp.float32)
    ref2 = gc_block_ref(x2, params)
    out2 = jax.block_until_ready(gc_block(x2, params))
    assert jnp.allclose(out2, ref2, **F32_TOL), (
        f"fused ragged: max abs err = {jnp.max(jnp.abs(out2 - ref2))}")
    out3 = jax.block_until_ready(
        gc_block(x2, params, force_hw_tiling=True, hw_tile=128))
    assert jnp.allclose(out3, ref2, **F32_TOL), (
        f"hw-tiled fallback: max abs err = {jnp.max(jnp.abs(out3 - ref2))}")

    print("KERNEL_OK")
</pallas_src>

<mosaic_0001>
module attributes {stable_mosaic.version = 11 : i64} {
  func.func @_gc_fused_kernel(%arg0: i32, %arg1: memref<2x8x256xf32, #tpu.memory_space<vmem>>, %arg2: memref<1x8xf32, #tpu.memory_space<vmem>>, %arg3: memref<8x2xf32, #tpu.memory_space<vmem>>, %arg4: memref<1x2xf32, #tpu.memory_space<vmem>>, %arg5: memref<2x8xf32, #tpu.memory_space<vmem>>, %arg6: memref<2x8x256xf32, #tpu.memory_space<vmem>>) attributes {dimension_semantics = [#tpu.dimension_semantics<parallel>], iteration_bounds = array<i64: 1>, scalar_prefetch = 0 : i64, scratch_operands = 0 : i64, tpu.core_type = #tpu.core_type<tc>, window_params = [{transform_indices = @transform_0, window_bounds = array<i64: 2, 8, 256>}, {pipeline_mode = #tpu.pipeline_mode<synchronous>, transform_indices = @transform_1, window_bounds = array<i64: 1, 8>}, {pipeline_mode = #tpu.pipeline_mode<synchronous>, transform_indices = @transform_2, window_bounds = array<i64: 8, 2>}, {pipeline_mode = #tpu.pipeline_mode<synchronous>, transform_indices = @transform_3, window_bounds = array<i64: 1, 2>}, {pipeline_mode = #tpu.pipeline_mode<synchronous>, transform_indices = @transform_4, window_bounds = array<i64: 2, 8>}, {transform_indices = @transform_5, window_bounds = array<i64: 2, 8, 256>}]} {
    %c0 = arith.constant 0 : index
    %c0_0 = arith.constant 0 : index
    %c0_1 = arith.constant 0 : index
    %0 = vector.load %arg1[%c0, %c0_0, %c0_1] : memref<2x8x256xf32, #tpu.memory_space<vmem>>, vector<2x8x256xf32>
    %c0_2 = arith.constant 0 : index
    %c0_3 = arith.constant 0 : index
    %1 = vector.load %arg2[%c0_2, %c0_3] : memref<1x8xf32, #tpu.memory_space<vmem>>, vector<1x8xf32>
    %2 = vector.shape_cast %1 : vector<1x8xf32> to vector<1x1x8xf32>
    %3 = vector.shape_cast %2 : vector<1x1x8xf32> to vector<1x1x8xf32>
    %4 = vector.broadcast %3 : vector<1x1x8xf32> to vector<2x1x8xf32>
    "tpu.trace_start"() <{level = 10 : i32, message = "bzc,bch->bzh"}> : () -> ()
    %cst = arith.constant dense<0.000000e+00> : vector<2x1x256xf32>
    %5 = tpu.matmul %4, %0, %cst {dimension_numbers = #tpu.dot_dimension_numbers<[2], [1], [1], [2], [0, 0, 0, 1, 1, 2], [0], [0]>} : vector<2x1x8xf32>, vector<2x8x256xf32>, vector<2x1x256xf32> -> vector<2x1x256xf32>
    "tpu.trace_stop"() : () -> ()
    %cst_4 = arith.constant dense<0xFF800000> : vector<2x1xf32>
    %6 = vector.multi_reduction <maximumf>, %5, %cst_4 [2] : vector<2x1x256xf32> to vector<2x1xf32>
    %7 = vector.shape_cast %6 : vector<2x1xf32> to vector<2x1x1xf32>
    %8 = vector.broadcast %7 : vector<2x1x1xf32> to vector<2x1x256xf32>
    %9 = arith.subf %5, %8 : vector<2x1x256xf32>
    %10 = math.exp %9 : vector<2x1x256xf32>
    %cst_5 = arith.constant dense<0.000000e+00> : vector<2x1xf32>
    %11 = vector.multi_reduction <add>, %10, %cst_5 [2] : vector<2x1x256xf32> to vector<2x1xf32>
    %12 = vector.shape_cast %11 : vector<2x1xf32> to vector<2x1x1xf32>
    "tpu.trace_start"() <{level = 10 : i32, message = "bzh,bch->bzc"}> : () -> ()
    %cst_6 = arith.constant dense<0.000000e+00> : vector<2x1x8xf32>
    %13 = tpu.matmul %10, %0, %cst_6 {dimension_numbers = #tpu.dot_dimension_numbers<[2], [2], [1], [1], [0, 0, 0, 1, 1, 1], [0], [0]>} : vector<2x1x256xf32>, vector<2x8x256xf32>, vector<2x1x8xf32> -> vector<2x1x8xf32>
    "tpu.trace_stop"() : () -> ()
    %14 = vector.shape_cast %13 : vector<2x1x8xf32> to vector<2x8xf32>
    %15 = vector.shape_cast %12 : vector<2x1x1xf32> to vector<2x1xf32>
    %16 = vector.broadcast %15 : vector<2x1xf32> to vector<2x8xf32>
    %17 = arith.divf %14, %16 : vector<2x8xf32>
    %c0_7 = arith.constant 0 : index
    %c0_8 = arith.constant 0 : index
    %18 = vector.load %arg3[%c0_7, %c0_8] : memref<8x2xf32, #tpu.memory_space<vmem>>, vector<8x2xf32>
    %cst_9 = arith.constant dense<0.000000e+00> : vector<2x2xf32>
    %19 = tpu.matmul %17, %18, %cst_9 {dimension_numbers = #tpu.dot_dimension_numbers<[1], [0], [0], [1], [0, 0, 1, 1], [], []>} : vector<2x8xf32>, vector<8x2xf32>, vector<2x2xf32> -> vector<2x2xf32>
    %c0_10 = arith.constant 0 : index
    %c0_11 = arith.constant 0 : index
    %20 = vector.load %arg4[%c0_10, %c0_11] : memref<1x2xf32, #tpu.memory_space<vmem>>, vector<1x2xf32>
    %21 = vector.broadcast %20 : vector<1x2xf32> to vector<2x2xf32>
    %22 = arith.addf %19, %21 : vector<2x2xf32>
    %cst_12 = arith.constant 0.000000e+00 : f32
    %23 = vector.broadcast %cst_12 : f32 to vector<2x2xf32>
    %24 = arith.maximumf %22, %23 : vector<2x2xf32>
    %c0_13 = arith.constant 0 : index
    %c0_14 = arith.constant 0 : index
    %25 = vector.load %arg5[%c0_13, %c0_14] : memref<2x8xf32, #tpu.memory_space<vmem>>, vector<2x8xf32>
    %cst_15 = arith.constant dense<0.000000e+00> : vector<2x8xf32>
    %26 = tpu.matmul %24, %25, %cst_15 {dimension_numbers = #tpu.dot_dimension_numbers<[1], [0], [0], [1], [0, 0, 1, 1], [], []>} : vector<2x2xf32>, vector<2x8xf32>, vector<2x8xf32> -> vector<2x8xf32>
    %27 = vector.shape_cast %26 : vector<2x8xf32> to vector<2x8x1xf32>
    %28 = vector.broadcast %27 : vector<2x8x1xf32> to vector<2x8x256xf32>
    %29 = arith.addf %0, %28 : vector<2x8x256xf32>
    %c0_16 = arith.constant 0 : index
    %c0_17 = arith.constant 0 : index
    %c0_18 = arith.constant 0 : index
    %30 = vector.load %arg6[%c0_16, %c0_17, %c0_18] : memref<2x8x256xf32, #tpu.memory_space<vmem>>, vector<2x8x256xf32>
    tpu.vector_store %arg6[%c0_16, %c0_17, %c0_18], %29 {strides = array<i32>} : memref<2x8x256xf32, #tpu.memory_space<vmem>>, vector<2x8x256xf32>,
    return
  }
  func.func @transform_0(%arg0: i32) -> (i32, i32, i32) {
    %c0_i32 = arith.constant 0 : i32
    %c0_i32_0 = arith.constant 0 : i32
    %c0_i32_1 = arith.constant 0 : i32
    return %arg0, %c0_i32, %c0_i32_0 : i32, i32, i32
  }
  func.func @transform_1(%arg0: i32) -> (i32, i32) {
    %c0_i32 = arith.constant 0 : i32
    %c0_i32_0 = arith.constant 0 : i32
    %c0_i32_1 = arith.constant 0 : i32
    return %c0_i32, %c0_i32_0 : i32, i32
  }
  func.func @transform_2(%arg0: i32) -> (i32, i32) {
    %c0_i32 = arith.constant 0 : i32
    %c0_i32_0 = arith.constant 0 : i32
    %c0_i32_1 = arith.constant 0 : i32
    return %c0_i32, %c0_i32_0 : i32, i32
  }
  func.func @transform_3(%arg0: i32) -> (i32, i32) {
    %c0_i32 = arith.constant 0 : i32
    %c0_i32_0 = arith.constant 0 : i32
    %c0_i32_1 = arith.constant 0 : i32
    return %c0_i32, %c0_i32_0 : i32, i32
  }
  func.func @transform_4(%arg0: i32) -> (i32, i32) {
    %c0_i32 = arith.constant 0 : i32
    %c0_i32_0 = arith.constant 0 : i32
    %c0_i32_1 = arith.constant 0 : i32
    return %c0_i32, %c0_i32_0 : i32, i32
  }
  func.func @transform_5(%arg0: i32) -> (i32, i32, i32) {
    %c0_i32 = arith.constant 0 : i32
    %c0_i32_0 = arith.constant 0 : i32
    %c0_i32_1 = arith.constant 0 : i32
    return %arg0, %c0_i32, %c0_i32_0 : i32, i32, i32
  }
}

</mosaic_0001>

<bundles_post_ra>
// kernel: tpu_custom_call.1
= control target key start
LH: loop header
LB: loop body
LE: loop exit
PB: predicated region body
PF: predicated region fallthrough
CT: control target
= control target key end

     0   :  { %10 = vsyncpa [#allocation3], 0  ;;  %s543_s0 = inlined_call_operand.hbm [shape: f32[2,8,256], index: 0, kind: input, shape index: {}]   ;;  %s544_s1 = inlined_call_operand.vmem [shape: f32[1,8], index: 1, kind: input, shape index: {}]   ;;  %s545_s2 = inlined_call_operand.vmem [shape: f32[8,2], index: 2, kind: input, shape index: {}]   ;;  %s546_s3 = inlined_call_operand.vmem [shape: f32[1,2], index: 3, kind: input, shape index: {}]   ;;  %s547_s4 = inlined_call_operand.vmem [shape: f32[2,8], index: 4, kind: input, shape index: {}]   ;;  %s548_s5 = inlined_call_operand.hbm [shape: f32[2,8,256], index: 5, kind: output, shape index: {}]  }
   0x1   :  { %11 = vsyncpa [#allocation4], 0  ;;  %s16_s20 = sshll.u32 %s543_s0, 4  ;;  %s452_s21 = smov [#allocation2]   ;;  %s17_s20 = int_to_ptr.hbm [resolvable:$true] %s16_s20 }
   0x2   :  { %s18_s22 = sshll.u32 %s452_s21, 4  ;;  %s453_s23 = smov 256   ;;  %s19_s22 = int_to_ptr.vmem [resolvable:$true] %s18_s22 }
   0x3   :  { %s454_s24 = smov 16  }
   0x4   :  { %24 = dma.hbm_to_vmem [thread:$0]  %s17_s20, 512, %s19_s22, [#allocation3], %s453_s23, %s453_s23, %s454_s24  }
   0x5   :  { %448 = dma.done.wait [#allocation3], 512  }
   0x6   :  { %449 = vsyncadd [#allocation3], 4294966784  ;;  %vm42_vm0 = vcmask 64512   ;;  %v492_v0 = vld [vmem:[#allocation2 + $0x10] sm:$0xff]  ;;  %v494_v1 = vld [vmem:[#allocation2 + $0x18] sm:$0xff]  ;;  %vm126_vm1 = vcmask 1040384  }
   0x7   :  { %v41_v2 = vld [vmem:[%s544_s1] sm:$0x1]  ;;  %101 = vmatpush.msra.mxu2 %v492_v0  ;;  %121 = vmatpush.msra.mxu3 %v494_v1  ;;  %v503_v4 = vld [vmem:[#allocation2 + $0x8] sm:$0xff]  ;;  %vm309_vm2 = vcmask 1041408   ;;  %vm279_vm11 = vcmask 1041409   ;;  %vm305_vm12 = vcmask 15360  }
   0x8   :  { %v501_v3 = vld [vmem:[#allocation2] sm:$0xff]  ;;  %376 = vmatmul.msk.f32.vlgmr.msra.gmra.mxu2 %vm42_vm0, %v41_v2  ;;  %377 = vmatmul.msk.f32.vlgmr.msra.gmra.mxu3 %vm42_vm0, %v41_v2  ;;  %s455_s29 = smov [#allocation5]   ;;  %s361_s7 = sshll.u32 %s548_s5, 4  ;;  %s362_s7 = int_to_ptr.hbm [resolvable:$true] %s361_s7 }
   0x9   :  { %61 = vmatpush.msra.mxu0 %v501_v3  ;;  %81 = vmatpush.msra.mxu1 %v503_v4  ;;  %v271_v35 = vld [vmem:[%s545_s2] sm:$0xff]  ;;  %s359_s30 = sshll.u32 %s455_s29, 4  ;;  %s360_s30 = int_to_ptr.vmem [resolvable:$true] %s359_s30 }
   0xa   :  { %374 = vmatmul.msk.f32.vlgmr.msra.gmra.mxu0 %vm42_vm0, %v41_v2  ;;  %375 = vmatmul.msk.f32.vlgmr.msra.gmra.mxu1 %vm42_vm0, %v41_v2  ;;  %v304_v36 = vld [vmem:[%s547_s4] sm:$0x3] }
   0xb   :  { %214 = vmatpush.xpose.msrb.mxu2 %v492_v0  ;;  %234 = vmatpush.xpose.msrb.mxu3 %v494_v1 }
   0xc   :  { %174 = vmatpush.xpose.msrb.mxu0 %v501_v3  ;;  %194 = vmatpush.xpose.msrb.mxu1 %v503_v4 }
  0x10   :  { %298 = vmatpush.msra.mxu0 %v271_v35  ;;  %379 = vmatpush.msk.msra.mxu1 %vm309_vm2, %v304_v36 }
  0x87   :  { %v63_v10 = vpop.f32.mrf.mxu0  ;;  %v83_v11 = vpop.f32.mrf.mxu1 }
  0x88   :  { %v127_v12 = vsel %vm126_vm1, %v63_v10, -inf  ;;  %v128_v13 = vsel %vm126_vm1, %v83_v11, -inf }
  0x89   :  { %v129_v14 = vmax.f32 %v127_v12, %v128_v13  ;;  %v387_v13 = vld [vmem:[%s546_s3] ss:$0 sm:$0xff] }
  0x8b   :  { %v103_v5 = vpop.f32.mrf.mxu2  ;;  %v123_v6 = vpop.f32.mrf.mxu3 }
  0x8c   :  { %v132_v7 = vsel %vm126_vm1, %v103_v5, -inf  ;;  %v133_v8 = vsel %vm126_vm1, %v123_v6, -inf }
  0x8d   :  { %v134_v9 = vmax.f32 %v132_v7, %v133_v8 }
  0x8f   :  { %135 = vmax.xlane.f32.xlu0 %v134_v9 }
  0x97   :  { %130 = vmax.xlane.f32.xlu0 %v129_v14 }
 0x102   :  { %v136_v15 = vpop.xlane.xlu0 %135 }
 0x103   :  { %v139_v16 = vsub.f32 %v103_v5, %v136_v15  ;;  %v140_v17 = vsub.f32 %v123_v6, %v136_v15 }
 0x105   :  { %v145_v18 = vmul.f32 1.442695, %v139_v16  ;;  %v147_v19 = vmul.f32 1.442695, %v140_v17 }
 0x107   :  { %388 = vpow2.f32 %v145_v18 }
 0x108   :  { %390 = vpow2.f32 %v147_v19 }
 0x10a   :  { %v131_v20 = vpop.xlane.xlu0 %130 }
 0x10b   :  { %v137_v21 = vsub.f32 %v63_v10, %v131_v20  ;;  %v138_v22 = vsub.f32 %v83_v11, %v131_v20  ;;  %v334_v11 = vlaneseq }
 0x10d   :  { %v389_v23 = vpop.eup %388  ;;  %v141_v24 = vmul.f32 1.442695, %v137_v21  ;;  %v143_v25 = vmul.f32 1.442695, %v138_v22  ;;  %v335_v12 = vshrl.u32 %v334_v11, 7 }
 0x10e   :  { %v391_v26 = vpop.eup %390  ;;  %215 = vmatmul.f32.vlgmr.msrb.gmra.mxu2 %v389_v23  ;;  %v154_v27 = vsel %vm126_vm1, %v389_v23, 0.0 }
 0x10f   :  { %392 = vpow2.f32 %v141_v24  ;;  %235 = vmatmul.f32.vlgmr.msrb.gmra.mxu3 %v391_v26  ;;  %v155_v28 = vsel %vm126_vm1, %v391_v26, 0.0  ;;  %385 = vset.pattern.permute.xlu2 %v335_v12 }
 0x110   :  { %394 = vpow2.f32 %v143_v25  ;;  %v156_v29 = vadd.f32 %v155_v28, %v154_v27  ;;  %386 = vset.pattern.permute.xlu0 %v335_v12 }
 0x112   :  { %157 = vadd.xlane.f32.xlu1 %v156_v29 }
 0x115   :  { %v393_v30 = vpop.eup %392 }
 0x116   :  { %v395_v31 = vpop.eup %394  ;;  %175 = vmatmul.f32.vlgmr.msrb.gmra.mxu0 %v393_v30  ;;  %v149_v32 = vsel %vm126_vm1, %v393_v30, 0.0 }
 0x117   :  { %195 = vmatmul.f32.vlgmr.msrb.gmra.mxu1 %v395_v31  ;;  %v150_v33 = vsel %vm126_vm1, %v395_v31, 0.0 }
 0x118   :  { %v151_v34 = vadd.f32 %v150_v33, %v149_v32 }
 0x11a   :  { %152 = vadd.xlane.f32.xlu1 %v151_v34 }
 0x185   :  { %v158_v37 = vpop.xlane.xlu1 %157 }
 0x186   :  { %v240_v38 = vperm.slane %v158_v37, 0 }
 0x188   :  { %396 = vrcp.f32 %v240_v38  ;;  %v267_v45 = vand.u32 2147483648, %v240_v38  ;;  %vm261_vm4 = vweird.f32 %v240_v38  ;;  %v265_v47 = vand.u32 2147483647, %v240_v38 }
 0x18a   :  { %v268_v53 = vor.u32 1.1754944e-38, %v267_v45  ;;  %vm266_vm6 = vcmp.eq.f32.partialorder %v265_v47, 8.507059e+37 }
 0x18d   :  { %v153_v39 = vpop.xlane.xlu1 %152 }
 0x18e   :  { %v397_v40 = vpop.eup %396  ;;  %v239_v41 = vperm.slane %v153_v39, 0 }
 0x18f   :  { %v257_v42 = vmul.f32 %v397_v40, %v240_v38  ;;  %vm262_vm3 = vweird.f32 %v397_v40 }
 0x190   :  { %398 = vrcp.f32 %v239_v41  ;;  %vm263_vm5 = vmor %vm261_vm4, %vm262_vm3  ;;  %v252_v56 = vand.u32 2147483648, %v239_v41  ;;  %v250_v59 = vand.u32 2147483647, %v239_v41  ;;  %vm246_vm8 = vweird.f32 %v239_v41 }
 0x191   :  { %v258_v43 = vsub.f32 1.0, %v257_v42  ;;  %v216_v51 = vpop.f32.mrf.mxu2 }
 0x192   :  { %v236_v52 = vpop.f32.mrf.mxu3  ;;  %v253_v2 = vor.u32 1.1754944e-38, %v252_v56  ;;  %vm251_vm10 = vcmp.eq.f32.partialorder %v250_v59, 8.507059e+37 }
 0x193   :  { %v259_v44 = vmul.f32 %v397_v40, %v258_v43  ;;  %v237_v57 = vadd.f32 %v236_v52, %v216_v51  ;;  %v176_v60 = vpop.f32.mrf.mxu0 }
 0x194   :  { %v196_v61 = vpop.f32.mrf.mxu1 }
 0x195   :  { %v260_v46 = vadd.f32 %v397_v40, %v259_v44  ;;  %v197_v5 = vadd.f32 %v196_v61, %v176_v60 }
 0x196   :  { %v399_v48 = vpop.eup %398 }
 0x197   :  { %v242_v49 = vmul.f32 %v399_v48, %v239_v41  ;;  %v264_v50 = vsel %vm263_vm5, %v397_v40, %v260_v46  ;;  %vm247_vm7 = vweird.f32 %v399_v48 }
 0x198   :  { %v269_v55 = vsel %vm266_vm6, %v268_v53, %v264_v50  ;;  %vm248_vm9 = vmor %vm246_vm8, %vm247_vm7 }
 0x199   :  { %v243_v54 = vsub.f32 1.0, %v242_v49  ;;  %v270_v62 = vmul.f32 %v269_v55, %v237_v57 }
 0x19b   :  { %v244_v58 = vmul.f32 %v399_v48, %v243_v54  ;;  %v278_v8 = vrot.slane %v270_v62, 7 }
 0x19d   :  { %v245_v63 = vadd.f32 %v399_v48, %v244_v58 }
 0x19f   :  { %v249_v6 = vsel %vm248_vm9, %v399_v48, %v245_v63 }
 0x1a0   :  { %v254_v7 = vsel %vm251_vm10, %v253_v2, %v249_v6 }
 0x1a1   :  { %v255_v9 = vmul.f32 %v254_v7, %v197_v5 }
 0x1a3   :  { %v280_v10 = vsel %vm279_vm11, %v278_v8, %v255_v9 }
 0x1a4   :  { %378 = vmatmul.msk.f32.vlgmr.msra.gmra.mxu0 %vm42_vm0, %v280_v10 }
 0x221   :  { %v300_v14 = vpop.f32.mrf.mxu0 }
 0x222   :  { %v301_v15 = vadd.f32 %v387_v13, %v300_v14 }
 0x224   :  { %v303_v16 = vmax.f32 %v301_v15, 0.0 }
 0x226   :  { %380 = vmatmul.msk.f32.vlgmr.msra.gmra.mxu1 %vm305_vm12, %v303_v16 }
 0x2a3   :  { %v330_v17 = vpop.f32.mrf.mxu1 }
 0x2a4   :  { %v333_v18 = vperm.slane %v330_v17, 0  ;;  %v340_v19 = vperm.slane %v330_v17, 1 }
 0x2a6   :  { %338 = vperm.xlu2 %385, %v333_v18  }
 0x2ae   :  { %345 = vperm.xlu2 %385, %v340_v19  }
 0x300   :  { %v339_v20 = vpop.permute.xlu2 %338 }
 0x301   :  { %v347_v21 = vadd.f32 %v339_v20, %v501_v3  ;;  %v348_v22 = vadd.f32 %v339_v20, %v503_v4 }
 0x303   :  { %351 = vst [vmem:[#allocation5] sm:$0xff] %v347_v21 }
 0x304   :  { %352 = vst [vmem:[#allocation5 + $0x8] sm:$0xff] %v348_v22 }
 0x308   :  { %v346_v23 = vpop.permute.xlu2 %345 }
 0x309   :  { %v349_v24 = vadd.f32 %v346_v23, %v492_v0  ;;  %v350_v25 = vadd.f32 %v346_v23, %v494_v1 }
 0x30b   :  { %353 = vst [vmem:[#allocation5 + $0x10] sm:$0xff] %v349_v24 }
 0x30c   :  { %354 = vst [vmem:[#allocation5 + $0x18] sm:$0xff] %v350_v25 }
 0x30d   :  { %367 = dma.vmem_to_hbm [thread:$0]  %s360_s30, 512, %s362_s7, [#allocation4], %s453_s23, %s453_s23, %s454_s24  }
 0x30e   :  { %450 = dma.done.wait [#allocation4], 512  }
 0x30f   :  { %451 = vsyncadd [#allocation4], 4294966784 }
 0x310   :  { %372 = vsyncpa [#allocation3], 1 }
 0x311   :  { %373 = vsyncpa [#allocation4], 1 }

</bundles_post_ra>
